<compile_context>
chip_gen: v7x
topology: tpu7x:2x2x1
jax: 0.10.0
libtpu: 0.0.40
codegen_flags: <defaults>
</compile_context>

<pallas_src>
import functools

import numpy as np
import jax
import jax.numpy as jnp
from jax.experimental import pallas as pl
from jax.experimental.pallas import tpu as pltpu


def build_position_encoding_table(d_model: int, max_seq_len: int) -> np.ndarray:
    """Exactly mirrors the PyTorch __init__ table construction."""
    pe = np.array(
        [[pos / np.power(10000, 2.0 * (j // 2) / d_model) for j in range(d_model)]
         for pos in range(max_seq_len)]
    )
    pe[:, 0::2] = np.sin(pe[:, 0::2])
    pe[:, 1::2] = np.cos(pe[:, 1::2])
    pad_row = np.zeros([1, d_model])
    table = np.concatenate((pad_row, pe), axis=0)  # (max_seq_len + 1, d_model)
    return table.astype(np.float32)


def _pe_mask_kernel(len_ref, table_ref, o_ref, *, d_model: int, tile_l: int):
    # len_ref:   SMEM (B,) int32        -- scalar-prefetched sequence lengths
    # table_ref: VMEM (1, 1, tile_l) f32 -- resident chunk of flattened table[1:max_len+1]
    # o_ref:     VMEM (1, 1, tile_l) f32 -- output chunk for one batch row
    j = pl.program_id(0)  # chunk index along the flattened (max_len * d_model) axis
    b = pl.program_id(1)  # batch row
    # Flat element k belongs to time-step k // d_model; it is kept iff
    #   (k // d_model) < len[b]   <=>   k < len[b] * d_model.
    # Shift the threshold into this chunk's local coordinates (no division needed).
    thresh = len_ref[b] * d_model - j * tile_l
    lane = jax.lax.broadcasted_iota(jnp.int32, (1, 1, tile_l), 2)
    o_ref[...] = jnp.where(lane < thresh, table_ref[...], 0.0)


def _pick_tile_l(L: int, max_elems: int = 1 << 19) -> int:
    """Largest chunk size that is a multiple of 128, divides L and fits the
    per-buffer budget (~2 MiB f32); falls back to the full extent."""
    if L <= max_elems:
        return L
    t = (max_elems // 128) * 128
    while t >= 128:
        if L % t == 0:
            return t
        t -= 128
    return L


def positional_encoding_forward(input_len: jnp.ndarray,
                                table: jnp.ndarray,
                                max_len: int | None = None) -> jnp.ndarray:
    """input_len: (B,) int lengths; table: (max_seq_len+1, d_model) f32.

    Pass a static `max_len` (e.g. max_seq_len or a bucketed value) in production
    to avoid the host sync and the per-length recompile; `None` reproduces the
    PyTorch data-dependent max(input_len) behaviour exactly.
    """
    B = int(input_len.shape[0])
    d_model = int(table.shape[1])
    if max_len is None:
        # TODO(synk): data-dependent output shape (max_len = max(input_len)) has no
        # device-side equivalent in JAX; resolved with a host sync to match PyTorch.
        max_len = int(jax.device_get(jnp.max(input_len)))
    max_len = int(max_len)

    L = max_len * d_model
    tile_l = _pick_tile_l(L)
    n_l = L // tile_l

    # Lane-dense slab of the rows we actually use: (1, 1, max_len * d_model).
    table_flat = table[1:max_len + 1].reshape(1, 1, L)
    lens = input_len.astype(jnp.int32)

    kernel = functools.partial(_pe_mask_kernel, d_model=d_model, tile_l=tile_l)

    # VMEM budget: double-buffered table chunk + double-buffered output chunk + slack.
    vmem_budget = int(min(32 * 1024 * 1024, max(8 * 1024 * 1024, 8 * tile_l * 4)))

    out_flat = pl.pallas_call(
        kernel,
        out_shape=jax.ShapeDtypeStruct((B, 1, L), jnp.float32),
        grid_spec=pltpu.PrefetchScalarGridSpec(
            num_scalar_prefetch=1,
            grid=(n_l, B),  # batch innermost -> table chunk stays resident across it
            in_specs=[
                pl.BlockSpec((1, 1, tile_l), lambda j, b, _ls: (0, 0, j)),
            ],
            out_specs=pl.BlockSpec((1, 1, tile_l), lambda j, b, _ls: (b, 0, j)),
        ),
        compiler_params=pltpu.CompilerParams(
            dimension_semantics=("parallel", "parallel"),
            vmem_limit_bytes=vmem_budget,
        ),
        cost_estimate=pl.CostEstimate(
            flops=0,
            transcendentals=0,
            bytes_accessed=B * L * 4 + L * 4 + B * 4,
        ),
    )(lens, table_flat)

    # Contiguous reshape back to the PyTorch layout (metadata only).
    return out_flat.reshape(B, max_len, d_model)


if __name__ == "__main__":
    # Small, deterministic shapes consistent with the module.
    B = 4
    d_model = 32
    max_seq_len = 16

    key = jax.random.PRNGKey(0)
    input_len = jax.random.randint(key, (B,), 1, max_seq_len + 1, dtype=jnp.int32)

    table_np = build_position_encoding_table(d_model, max_seq_len)
    table = jnp.asarray(table_np)

    out = positional_encoding_forward(input_len, table)
    out = jax.block_until_ready(out)

    # Reference check (mirrors the PyTorch forward's python loops + embedding gather).
    lens_np = np.asarray(jax.device_get(input_len))
    max_len = int(lens_np.max())
    pos_ref = np.zeros((B, max_len), dtype=np.int64)
    for b, length in enumerate(lens_np):
        for p in range(1, int(length) + 1):
            pos_ref[b, p - 1] = p
    ref = table_np[pos_ref]  # (B, max_len, d_model)
    np.testing.assert_allclose(np.asarray(jax.device_get(out)), ref, rtol=1e-6, atol=1e-6)

    print("KERNEL_OK")
</pallas_src>

<mosaic_0001>
module attributes {stable_mosaic.version = 11 : i64} {
  func.func @_pe_mask_kernel(%arg0: i32, %arg1: i32, %arg2: memref<4xi32, #tpu.memory_space<smem>>, %arg3: memref<1x1x448xf32, #tpu.memory_space<vmem>>, %arg4: memref<1x1x448xf32, #tpu.memory_space<vmem>>) attributes {dimension_semantics = [#tpu.dimension_semantics<parallel>, #tpu.dimension_semantics<parallel>], iteration_bounds = array<i64: 1, 4>, scalar_prefetch = 1 : i64, scratch_operands = 0 : i64, tpu.core_type = #tpu.core_type<tc>, window_params = [{transform_indices = @transform_0, window_bounds = array<i64: 1, 1, 448>}, {transform_indices = @transform_1, window_bounds = array<i64: 1, 1, 448>}]} {
    %0 = arith.index_cast %arg1 : i32 to index
    %1 = memref.load %arg2[%0] : memref<4xi32, #tpu.memory_space<smem>>
    %c32_i32 = arith.constant 32 : i32
    %2 = arith.muli %1, %c32_i32 : i32
    %c448_i32 = arith.constant 448 : i32
    %3 = arith.muli %arg0, %c448_i32 : i32
    %4 = arith.subi %2, %3 : i32
    %5 = tpu.iota {dimensions = array<i32: 2>} : vector<1x1x448xi32>
    %6 = vector.broadcast %4 : i32 to vector<1x1x448xi32>
    %7 = arith.cmpi slt, %5, %6 : vector<1x1x448xi32>
    %c0 = arith.constant 0 : index
    %c0_0 = arith.constant 0 : index
    %c0_1 = arith.constant 0 : index
    %8 = vector.load %arg3[%c0, %c0_0, %c0_1] : memref<1x1x448xf32, #tpu.memory_space<vmem>>, vector<1x1x448xf32>
    %cst = arith.constant 0.000000e+00 : f32
    %9 = vector.broadcast %cst : f32 to vector<1x1x448xf32>
    %10 = arith.select %7, %8, %9 : vector<1x1x448xi1>, vector<1x1x448xf32>
    %c0_2 = arith.constant 0 : index
    %c0_3 = arith.constant 0 : index
    %c0_4 = arith.constant 0 : index
    %11 = vector.load %arg4[%c0_2, %c0_3, %c0_4] : memref<1x1x448xf32, #tpu.memory_space<vmem>>, vector<1x1x448xf32>
    tpu.vector_store %arg4[%c0_2, %c0_3, %c0_4], %10 {strides = array<i32>} : memref<1x1x448xf32, #tpu.memory_space<vmem>>, vector<1x1x448xf32>,
    return
  }
  func.func @transform_0(%arg0: i32, %arg1: i32, %arg2: memref<4xi32, #tpu.memory_space<smem>>) -> (i32, i32, i32) {
    %c0_i32 = arith.constant 0 : i32
    %c0_i32_0 = arith.constant 0 : i32
    %c0_i32_1 = arith.constant 0 : i32
    return %c0_i32, %c0_i32_0, %arg0 : i32, i32, i32
  }
  func.func @transform_1(%arg0: i32, %arg1: i32, %arg2: memref<4xi32, #tpu.memory_space<smem>>) -> (i32, i32, i32) {
    %c0_i32 = arith.constant 0 : i32
    %c0_i32_0 = arith.constant 0 : i32
    return %arg1, %c0_i32, %arg0 : i32, i32, i32
  }
}

</mosaic_0001>

<bundles_post_ra>
// kernel: tpu_custom_call.1
= control target key start
LH: loop header
LB: loop body
LE: loop exit
PB: predicated region body
PF: predicated region fallthrough
CT: control target
= control target key end

     0   :  { %s687_s0 = inlined_call_operand.hbm [shape: s32[4], index: 0, kind: input, shape index: {}]   ;;  %s688_s1 = inlined_call_operand.hbm [shape: f32[1,1,448], index: 1, kind: input, shape index: {}]   ;;  %s689_s2 = inlined_call_operand.hbm [shape: f32[4,1,448], index: 2, kind: output, shape index: {}]  }
   0x1   :  { %s382_s11 = scalar_lea.hbm %s687_s0, 16 }
   0x2   :  { %p383_p0 = scmp.ne.s32.totalorder %s687_s0, %s382_s11  ;;  %p386_p1 = scmp.lt.u32.totalorder %s382_s11, %s687_s0 }
   0x4   :  { %p388_p2 = pnand %p386_p1, %p383_p0 }
   0x6   :  { %391 = shalt.err (!%p388_p2)  }
   0x7   :  { %s506_s16 = smov [#allocation3]  }
   0x8   :  { %8 = dma.hbm_to_smem %s687_s0, 16, %s506_s16, [#allocation2] }
   0x9   :  { %472 = dma.done.wait [#allocation2], 16 }
   0xa   :  { %473 = vsyncadd [#allocation2], 4294967280 }
   0xb   :  { %10 = sfence }
   0xc   :  { %11 = vsyncpa [#allocation5], 0 }
   0xd   :  { %12 = vsyncpa [#allocation6], 0 }
   0xe   :  { %14 = vsyncpa [#allocation6 + $0x1], 0  ;;  %s537_s19 = smov 0   ;;  %s539_s20 = smov 0  }
   0xf   :  { %s541_s21 = smov 0   ;;  %s543_s22 = smov 0  }
  0x10   :  { %s545_s23 = smov 0   ;;  %s547_s24 = smov 0  }
  0x11 LB: > { %s300_s0 = sadd.s32 4294967295, %s504_s24   ;;  %s301_s25 = sadd.s32 4294967294, %s504_s24   ;;  %s504_s24 = sphi %s547_s24, %s20_s24   ;;  %s500_s23 = sphi %s545_s23, %s707_s23   ;;  %s496_s22 = sphi %s543_s22, %s706_s22   ;;  %s492_s21 = sphi %s541_s21, %s705_s21   ;;  %s488_s20 = sphi %s539_s20, %s704_s20   ;;  %s484_s19 = sphi %s537_s19, %s703_s19  }
  0x12   : > { %s29_s26 = sadd.s32 1, %s500_s23  ;;  %s67_s27 = sadd.s32 1, %s492_s21 }
  0x13   : > { %p30_p3 = scmp.ge.s32.totalorder %s29_s26, 4  ;;  %p77_p4 = scmp.ne.s32.totalorder %s492_s21, %s488_s20 }
  0x14   : > { %p78_p5 = scmp.eq.s32.totalorder %s300_s0, 3  ;;  %p83_p6 = scmp.ne.s32.totalorder %s488_s20, %s484_s19 }
  0x15   : > { %s709_s26 = smov (%p30_p3, %s29_s26), 0  ;;  %p84_p8 = scmp.eq.s32.totalorder %s301_s25, 3 }
  0x16   : > { %p577_p7 = por %p78_p5, %p77_p4  ;;  %s62_s29 = ssub.s32 %s500_s23, %s709_s26 }
  0x17   : > { %p302_p9 = scmp.ge.s32.totalorder %s504_s24, 1  ;;  %p65_p10 = scmp.eq.s32.totalorder %s62_s29, 0 }
  0x18   : > { %s694_s28 = scalar_select %p577_p7, 1, 0 }
  0x19   : > { %p584_p11 = por %p84_p8, %p83_p6  ;;  %p91_p12 = scmp.lt.s32.totalorder %s504_s24, 5 }
  0x1a   : > { %s590_s3 = scalar_select %p65_p10, %s492_s21, %s67_s27  }
  0x1b   : > { %s695_s30 = scalar_select %p584_p11, 1, 0 }
  0x1c   : > { %p592_p13 = pnand %p302_p9, %p91_p12  ;;  %p596_p0 = scmp.eq.s32.totalorder %s300_s0, 0 }
  0x1d   : > { %s507_s6 = smov [#allocation4]   ;;  %s392_s11 = scalar_lea.hbm %s688_s1, 64 }
  0x1e   : > { %s696_s4 = scalar_select %p592_p13, 1, 0 }
  0x1f   : > { %s697_s5 = scalar_select %p596_p0, 1, 0 }
  0x20   : > { %p320_p1 = pneg %p592_p13  ;;  %s107_s7 = sshll.u32 %s507_s6, 4  ;;  %s108_s7 = int_to_ptr.vmem [resolvable:$true] %s107_s7 }
  0x21   : > { %p393_p3 = scmp.ne.s32.totalorder %s688_s1, %s392_s11  ;;  %p399_p8 = scmp.lt.u32.totalorder %s392_s11, %s688_s1 }
  0x22   : > { %p604_p2 = pnand %p596_p0, %p320_p1 }
  0x24   : > { %p394_p4 = pneg %p604_p2 }
  0x26   : > { %p395_p5 = pnand %p394_p4, %p393_p3 }
  0x28   : > { %p396_p6 = pneg %p395_p5 }
  0x2a   : > { %p401_p9 = pnand %p399_p8, %p396_p6 }
  0x2c   : > { %404 = shalt.err (!%p401_p9)
}
  0x2d   : > { %s405_s16 = scalar_lea.vmem %s108_s7, 64  ;;  %p413_p11 = scmp.lt.s32.totalorder %s108_s7, %s108_s7 }
  0x2e   : > { %p406_p10 = scmp.ne.s32.totalorder %s108_s7, %s405_s16  ;;  %p414_p7 = scmp.lt.s32.totalorder %s405_s16, %s405_s16 }
  0x30   : > { %p408_p12 = pnand %p406_p10, %p394_p4  ;;  %p415_p0 = por %p414_p7, %p413_p11 }
  0x32   : > { %p409_p1 = pneg %p408_p12 }
  0x34   : > { %p416_p13 = pnand %p415_p0, %p409_p1 }
  0x36   : > { %419 = shalt.err (!%p416_p13)
}
  0x37   : > { %323 = dma.hbm_to_vmem [thread:$0]  (!%p604_p2), %s688_s1, 64, %s108_s7, [#allocation5]  }
  0x38   : > { %p699_p3 = scmp.ne.s32.totalorder %s696_s4, 0 }
  0x39   : > { %p700_p5 = scmp.ne.s32.totalorder (!%p699_p3), %s697_s5, 0 }
  0x3a   : > { %120 = sbr.rel (%p699_p3) target bundleno = 98 (0x62), region = 24 }
  0x41   : > { %475 = dma.done.wait (%p700_p5), [#allocation5], 64  }
  0x42   : > { %477 = vsyncadd (%p700_p5), [#allocation5], 4294967232  ;;  %v141_v0 = vlaneseq  ;;  %s137_s0 = sld [smem:[#allocation3 + %s496_s22]]  ;;  %v508_v1 = vmov 1966171168   ;;  %s132_s27 = sand.u32 1, %s488_s20  }
  0x43   : > { %v184_v2 = vunpack.c.l.s4 %v508_v1  ;;  %v151_v13 = vld [vmem:[#allocation4] sm:$0xf]  ;;  %s306_s29 = sshll.u32 %s132_s27, 2  ;;  %s313_s6 = sshll.u32 %s496_s22, 6 }
  0x44   : > { %v142_v3 = vand.u32 127, %v141_v0  ;;  %v154_v4 = vshrl.u32 %v141_v0, 7  ;;  %s134_s4 = scalar_lea.vmem [#allocation7], %s306_s29  ;;  %vm208_vm4 = vcmp.lt.s32.totalorder %v141_v0, 448  ;;  %s640_s9 = scalar_lea.hbm %s689_s2, %s313_s6 }
  0x45   : > { %v185_v5 = vunpack.c.0.s8 %v184_v2  ;;  %s228_s5 = sshll.u32 %s134_s4, 4  ;;  %s212_s10 = scalar_lea.sflag [#allocation6], %s132_s27  ;;  %s635_s5 = int_to_ptr.vmem [resolvable:$true] %s228_s5 }
  0x46   : > { %v143_v6 = vadd.s32 128, %v142_v3  ;;  %v155_v7 = vsub.s32 0, %v154_v4  ;;  %v144_v8 = vadd.s32 256, %v142_v3  ;;  %v145_v9 = vadd.s32 384, %v142_v3  ;;  %s420_s11 = scalar_lea.vmem %s635_s5, 64  ;;  %p701_p11 = scmp.ne.s32.totalorder %s694_s28, 0 }
  0x47   : > { %v159_v10 = vsub.s32 1, %v154_v4  ;;  %v163_v11 = vsub.s32 2, %v154_v4  ;;  %v167_v12 = vsub.s32 3, %v154_v4  ;;  %v188_v14 = vsub.s32 %v185_v5, %v154_v4  ;;  %p421_p7 = scmp.ne.s32.totalorder %s635_s5, %s420_s11  ;;  %s509_s22 = smov [#allocation7]  }
  0x48   : > { %s307_s25 = sshll.u32 %s137_s0, 5  ;;  %v156_v16 = vrot.slane %v151_v13, %v155_v7  ;;  %s424_s12 = sshll.u32 %s509_s22, 4  ;;  %s425_s12 = int_to_ptr.vmem [resolvable:$false] %s424_s12 }
  0x49   : > { %v146_v15 = vstv %s307_s25  ;;  %v160_v17 = vrot.slane %v151_v13, %v159_v10  ;;  %v164_v18 = vrot.slane %v151_v13, %v163_v11  ;;  %v168_v19 = vrot.slane %v151_v13, %v167_v12  ;;  %p422_p13 = pnand %p421_p7, %p701_p11  ;;  %s426_s13 = scalar_lea.vmem %s425_s12, 128 }
  0x4a   : > { %vm147_vm0 = vcmp.lt.s32.totalorder %v142_v3, %v146_v15  ;;  %vm148_vm1 = vcmp.lt.s32.totalorder %v143_v6, %v146_v15  ;;  %vm149_vm2 = vcmp.lt.s32.totalorder %v144_v8, %v146_v15  ;;  %vm150_vm3 = vcmp.lt.s32.totalorder %v145_v9, %v146_v15  ;;  %p427_p2 = scmp.lt.s32.totalorder %s635_s5, %s425_s12  ;;  %p428_p4 = scmp.lt.s32.totalorder %s426_s13, %s420_s11 }
  0x4b   : > { %v173_v20 = vsel %vm147_vm0, %v156_v16, 0.0  ;;  %v174_v21 = vsel %vm148_vm1, %v160_v17, 0.0  ;;  %v175_v22 = vsel %vm149_vm2, %v164_v18, 0.0  ;;  %v176_v24 = vsel %vm150_vm3, %v168_v19, 0.0  ;;  %p423_p0 = pneg %p422_p13 }
  0x4c   : > { %v181_v23 = vcombine.low %v173_v20, %v174_v21  ;;  %v182_v25 = vcombine.low %v175_v22, %v176_v24  ;;  %p429_p6 = por %p428_p4, %p427_p2 }
  0x4e   : > { %v189_v26 = vrot.slane %v181_v23, %v188_v14  ;;  %v196_v27 = vrot.slane %v182_v25, %v188_v14  ;;  %p430_p8 = pnand %p429_p6, %p423_p0 }
  0x50   : > { %v197_v28 = vcombine.low %v189_v26, %v196_v27 }
  0x52   : > { %v204_v29 = vrot.slane %v197_v28, %v188_v14 }
  0x54   : > { %210 = vst.msk [vmem:[%s134_s4] sm:$0xf] %vm208_vm4, %v204_v29 }
  0x55   : > { %433 = shalt.err (!%p430_p8)
}
  0x56   : > { %s434_s14 = scalar_lea.hbm %s640_s9, 64  ;;  %s438_s17 = scalar_lea.hbm %s689_s2, 256 }
  0x57   : > { %p435_p9 = scmp.ne.s32.totalorder %s640_s9, %s434_s14  ;;  %p439_p1 = scmp.lt.u32.totalorder %s640_s9, %s689_s2 }
  0x58   : > { %p440_p3 = scmp.lt.u32.totalorder %s438_s17, %s434_s14  ;;  %p442_p7 = scmp.lt.u32.totalorder %s434_s14, %s640_s9 }
  0x59   : > { %p436_p10 = pnand %p435_p9, %p701_p11 }
  0x5a   : > { %p441_p5 = por %p440_p3, %p439_p1 }
  0x5b   : > { %p437_p12 = pneg %p436_p10 }
  0x5c   : > { %p443_p13 = por %p442_p7, %p441_p5 }
  0x5e   : > { %p444_p0 = pnand %p443_p13, %p437_p12 }
  0x60   : > { %447 = shalt.err (!%p444_p0)
}
  0x61   : > { %318 = dma.vmem_to_hbm [thread:$0]  (%p701_p11), %s635_s5, 64, %s640_s9, %s212_s10  }
  0x62 PF: > { %p330_p2 = scmp.ge.s32.totalorder %s504_s24, 2  ;;  %s240_s25 = sand.u32 1, %s484_s19  }
  0x63   : > { %p702_p4 = scmp.ne.s32.totalorder %s695_s30, 0  ;;  %s241_s27 = scalar_lea.sflag [#allocation6], %s240_s25 }
  0x65   : > { %p325_p6 = pnand %p330_p2, %p702_p4 }
  0x67   : > { %479 = dma.done.wait (!%p325_p6), %s241_s27, 64  }
  0x68   : > { %481 = vsyncadd (!%p325_p6), %s241_s27, 4294967232  ;;  %s20_s24 = sadd.s32 1, %s504_s24   ;;  %s703_s19 = smov %s488_s20 }
  0x69   : > { %p17_p8 = scmp.ge.s32.totalorder %s20_s24, 6   ;;  %s704_s20 = smov %s492_s21 }
  0x6a   : > { %s705_s21 = smov %s590_s3  ;;  %s706_s22 = smov %s500_s23 }
  0x6b   : > { %s707_s23 = smov %s709_s26  ;;  %19 = sbr.rel (!%p17_p8) target bundleno = 17 (0x11), region = 62 }
  0x72   :  { %246 = vsyncpa [#allocation5], 1 }
  0x73   :  { %248 = vsyncpa [#allocation5 + $0x1], 1 }
  0x74   :  { %249 = vsyncpa [#allocation6], 1 }
  0x75   :  { %251 = vsyncpa [#allocation6 + $0x1], 1 }

</bundles_post_ra>
